<compile_context>
chip_gen: v7x
topology: tpu7x:2x2x1
jax: 0.10.0
libtpu: 0.0.40
codegen_flags: <defaults>
</compile_context>

<pallas_src>
import jax
import jax.numpy as jnp
from jax.experimental import pallas as pl
from jax.experimental.pallas import tpu as pltpu

IN_DIM = 21 * 3   # 63
H1_DIM = 45
H2_DIM = 35
OUT_DIM = 5


def _round_up(n, m):
    return ((n + m - 1) // m) * m


def handnet_kernel(x_ref, w1_ref, b1_ref, w2_ref, b2_ref, w3_ref, b3_ref, o_ref):
    # layer1 + ReLU  (bf16 x bf16 -> f32 accumulate, bias/ReLU in f32)
    h1 = jnp.dot(x_ref[...], w1_ref[...], preferred_element_type=jnp.float32)
    h1 = jnp.maximum(h1 + b1_ref[...], 0.0).astype(jnp.bfloat16)
    # layer2 + ReLU
    h2 = jnp.dot(h1, w2_ref[...], preferred_element_type=jnp.float32)
    h2 = jnp.maximum(h2 + b2_ref[...], 0.0).astype(jnp.bfloat16)
    # layer3 (no activation)
    out = jnp.dot(h2, w3_ref[...], preferred_element_type=jnp.float32) + b3_ref[...]
    o_ref[...] = out.astype(o_ref.dtype)


def handnet_forward(x, params, tb=2048):
    """x: [B, 63] float32. params: w1,b1,w2,b2,w3,b3 (w stored [in, out], f32).

    tb: max batch-tile size (rows per grid step); the actual tile is clamped to
    the (padded) batch so tiny batches pay a single grid step.
    """
    B = x.shape[0]

    # Batch tile: multiple of 8 (sublane), no larger than needed.
    TB = min(tb, _round_up(B, 8))
    Bp = _round_up(B, TB)
    if Bp != B:
        x = jnp.pad(x, ((0, Bp - B), (0, 0)))

    # bf16 on the streamed / MXU operands; biases stay f32 (added post-accum).
    x_bf = x.astype(jnp.bfloat16)
    w1 = params["w1"].astype(jnp.bfloat16)
    w2 = params["w2"].astype(jnp.bfloat16)
    w3 = params["w3"].astype(jnp.bfloat16)
    b1, b2, b3 = params["b1"], params["b2"], params["b3"]

    grid = (Bp // TB,)
    out = pl.pallas_call(
        handnet_kernel,
        out_shape=jax.ShapeDtypeStruct((Bp, OUT_DIM), jnp.float32),
        grid=grid,
        in_specs=[
            # streamed batch tile (double-buffered by the BlockSpec pipeline)
            pl.BlockSpec((TB, IN_DIM), lambda i: (i, 0)),
            # weights / biases: constant index_map -> fetched once, VMEM-resident
            pl.BlockSpec((IN_DIM, H1_DIM), lambda i: (0, 0)),
            pl.BlockSpec((1, H1_DIM), lambda i: (0, 0)),
            pl.BlockSpec((H1_DIM, H2_DIM), lambda i: (0, 0)),
            pl.BlockSpec((1, H2_DIM), lambda i: (0, 0)),
            pl.BlockSpec((H2_DIM, OUT_DIM), lambda i: (0, 0)),
            pl.BlockSpec((1, OUT_DIM), lambda i: (0, 0)),
        ],
        out_specs=pl.BlockSpec((TB, OUT_DIM), lambda i: (i, 0)),
        compiler_params=pltpu.CompilerParams(
            dimension_semantics=("parallel",)
        ),
    )(x_bf, w1, b1, w2, b2, w3, b3)

    return out[:B]


def init_params(key):
    """Deterministic parameter init matching HandNet's layer shapes."""
    dims = [(IN_DIM, H1_DIM), (H1_DIM, H2_DIM), (H2_DIM, OUT_DIM)]
    params = {}
    for i, (fan_in, fan_out) in enumerate(dims, start=1):
        key, kw, kb = jax.random.split(key, 3)
        bound = 1.0 / jnp.sqrt(fan_in)
        # PyTorch Linear stores weight as [out, in]; we store the transpose.
        params[f"w{i}"] = jax.random.uniform(
            kw, (fan_in, fan_out), jnp.float32, -bound, bound
        )
        params[f"b{i}"] = jax.random.uniform(
            kb, (1, fan_out), jnp.float32, -bound, bound
        )
    return params


def handnet_reference(x, params):
    """f32 reference that mirrors the kernel's bf16 quantization points."""
    def q(a):  # bf16 round-trip
        return a.astype(jnp.bfloat16).astype(jnp.float32)

    xb = q(x)
    w1, w2, w3 = q(params["w1"]), q(params["w2"]), q(params["w3"])
    h1 = jnp.maximum(xb @ w1 + params["b1"], 0.0)
    h1 = q(h1)
    h2 = jnp.maximum(h1 @ w2 + params["b2"], 0.0)
    h2 = q(h2)
    return h2 @ w3 + params["b3"]


if __name__ == "__main__":
    key = jax.random.PRNGKey(0)
    key, kx1, kx2 = jax.random.split(key, 3)
    params = init_params(key)

    # Small batch (single grid step, tile clamped to 8 rows).
    B1 = 8
    x1 = jax.random.normal(kx1, (B1, IN_DIM), jnp.float32)
    out1 = jax.block_until_ready(handnet_forward(x1, params))
    ref1 = handnet_reference(x1, params)
    assert out1.shape == (B1, OUT_DIM), out1.shape
    assert jnp.allclose(out1, ref1, atol=2e-3, rtol=2e-3), "mismatch (B=8)"

    # Non-multiple batch with a small tile to exercise grid + padding path.
    B2 = 100
    x2 = jax.random.normal(kx2, (B2, IN_DIM), jnp.float32)
    out2 = jax.block_until_ready(handnet_forward(x2, params, tb=64))
    ref2 = handnet_reference(x2, params)
    assert out2.shape == (B2, OUT_DIM), out2.shape
    assert jnp.allclose(out2, ref2, atol=2e-3, rtol=2e-3), "mismatch (B=100)"

    print("KERNEL_OK")
</pallas_src>

<mosaic_0001>
module attributes {stable_mosaic.version = 11 : i64} {
  func.func @handnet_kernel(%arg0: i32, %arg1: memref<8x63xbf16, #tpu.memory_space<vmem>>, %arg2: memref<63x45xbf16, #tpu.memory_space<vmem>>, %arg3: memref<1x45xf32, #tpu.memory_space<vmem>>, %arg4: memref<45x35xbf16, #tpu.memory_space<vmem>>, %arg5: memref<1x35xf32, #tpu.memory_space<vmem>>, %arg6: memref<35x5xbf16, #tpu.memory_space<vmem>>, %arg7: memref<1x5xf32, #tpu.memory_space<vmem>>, %arg8: memref<8x5xf32, #tpu.memory_space<vmem>>) attributes {dimension_semantics = [#tpu.dimension_semantics<parallel>], iteration_bounds = array<i64: 1>, scalar_prefetch = 0 : i64, scratch_operands = 0 : i64, tpu.core_type = #tpu.core_type<tc>, window_params = [{transform_indices = @transform_0, window_bounds = array<i64: 8, 63>}, {pipeline_mode = #tpu.pipeline_mode<synchronous>, transform_indices = @transform_1, window_bounds = array<i64: 63, 45>}, {pipeline_mode = #tpu.pipeline_mode<synchronous>, transform_indices = @transform_2, window_bounds = array<i64: 1, 45>}, {pipeline_mode = #tpu.pipeline_mode<synchronous>, transform_indices = @transform_3, window_bounds = array<i64: 45, 35>}, {pipeline_mode = #tpu.pipeline_mode<synchronous>, transform_indices = @transform_4, window_bounds = array<i64: 1, 35>}, {pipeline_mode = #tpu.pipeline_mode<synchronous>, transform_indices = @transform_5, window_bounds = array<i64: 35, 5>}, {pipeline_mode = #tpu.pipeline_mode<synchronous>, transform_indices = @transform_6, window_bounds = array<i64: 1, 5>}, {transform_indices = @transform_7, window_bounds = array<i64: 8, 5>}]} {
    %c0 = arith.constant 0 : index
    %c0_0 = arith.constant 0 : index
    %0 = vector.load %arg1[%c0, %c0_0] : memref<8x63xbf16, #tpu.memory_space<vmem>>, vector<8x63xbf16>
    %c0_1 = arith.constant 0 : index
    %c0_2 = arith.constant 0 : index
    %1 = vector.load %arg2[%c0_1, %c0_2] : memref<63x45xbf16, #tpu.memory_space<vmem>>, vector<63x45xbf16>
    %cst = arith.constant dense<0.000000e+00> : vector<8x45xf32>
    %2 = tpu.matmul %0, %1, %cst {dimension_numbers = #tpu.dot_dimension_numbers<[1], [0], [0], [1], [0, 0, 1, 1], [], []>} : vector<8x63xbf16>, vector<63x45xbf16>, vector<8x45xf32> -> vector<8x45xf32>
    %c0_3 = arith.constant 0 : index
    %c0_4 = arith.constant 0 : index
    %3 = vector.load %arg3[%c0_3, %c0_4] : memref<1x45xf32, #tpu.memory_space<vmem>>, vector<1x45xf32>
    %4 = vector.broadcast %3 : vector<1x45xf32> to vector<8x45xf32>
    %5 = arith.addf %2, %4 : vector<8x45xf32>
    %cst_5 = arith.constant 0.000000e+00 : f32
    %6 = vector.broadcast %cst_5 : f32 to vector<8x45xf32>
    %7 = arith.maximumf %5, %6 : vector<8x45xf32>
    %8 = arith.truncf %7 : vector<8x45xf32> to vector<8x45xbf16>
    %c0_6 = arith.constant 0 : index
    %c0_7 = arith.constant 0 : index
    %9 = vector.load %arg4[%c0_6, %c0_7] : memref<45x35xbf16, #tpu.memory_space<vmem>>, vector<45x35xbf16>
    %cst_8 = arith.constant dense<0.000000e+00> : vector<8x35xf32>
    %10 = tpu.matmul %8, %9, %cst_8 {dimension_numbers = #tpu.dot_dimension_numbers<[1], [0], [0], [1], [0, 0, 1, 1], [], []>} : vector<8x45xbf16>, vector<45x35xbf16>, vector<8x35xf32> -> vector<8x35xf32>
    %c0_9 = arith.constant 0 : index
    %c0_10 = arith.constant 0 : index
    %11 = vector.load %arg5[%c0_9, %c0_10] : memref<1x35xf32, #tpu.memory_space<vmem>>, vector<1x35xf32>
    %12 = vector.broadcast %11 : vector<1x35xf32> to vector<8x35xf32>
    %13 = arith.addf %10, %12 : vector<8x35xf32>
    %cst_11 = arith.constant 0.000000e+00 : f32
    %14 = vector.broadcast %cst_11 : f32 to vector<8x35xf32>
    %15 = arith.maximumf %13, %14 : vector<8x35xf32>
    %16 = arith.truncf %15 : vector<8x35xf32> to vector<8x35xbf16>
    %c0_12 = arith.constant 0 : index
    %c0_13 = arith.constant 0 : index
    %17 = vector.load %arg6[%c0_12, %c0_13] : memref<35x5xbf16, #tpu.memory_space<vmem>>, vector<35x5xbf16>
    %cst_14 = arith.constant dense<0.000000e+00> : vector<8x5xf32>
    %18 = tpu.matmul %16, %17, %cst_14 {dimension_numbers = #tpu.dot_dimension_numbers<[1], [0], [0], [1], [0, 0, 1, 1], [], []>} : vector<8x35xbf16>, vector<35x5xbf16>, vector<8x5xf32> -> vector<8x5xf32>
    %c0_15 = arith.constant 0 : index
    %c0_16 = arith.constant 0 : index
    %19 = vector.load %arg7[%c0_15, %c0_16] : memref<1x5xf32, #tpu.memory_space<vmem>>, vector<1x5xf32>
    %20 = vector.broadcast %19 : vector<1x5xf32> to vector<8x5xf32>
    %21 = arith.addf %18, %20 : vector<8x5xf32>
    %c0_17 = arith.constant 0 : index
    %c0_18 = arith.constant 0 : index
    %22 = vector.load %arg8[%c0_17, %c0_18] : memref<8x5xf32, #tpu.memory_space<vmem>>, vector<8x5xf32>
    tpu.vector_store %arg8[%c0_17, %c0_18], %21 {strides = array<i32>} : memref<8x5xf32, #tpu.memory_space<vmem>>, vector<8x5xf32>,
    return
  }
  func.func @transform_0(%arg0: i32) -> (i32, i32) {
    %c0_i32 = arith.constant 0 : i32
    %c0_i32_0 = arith.constant 0 : i32
    return %arg0, %c0_i32 : i32, i32
  }
  func.func @transform_1(%arg0: i32) -> (i32, i32) {
    %c0_i32 = arith.constant 0 : i32
    %c0_i32_0 = arith.constant 0 : i32
    %c0_i32_1 = arith.constant 0 : i32
    return %c0_i32, %c0_i32_0 : i32, i32
  }
  func.func @transform_2(%arg0: i32) -> (i32, i32) {
    %c0_i32 = arith.constant 0 : i32
    %c0_i32_0 = arith.constant 0 : i32
    %c0_i32_1 = arith.constant 0 : i32
    return %c0_i32, %c0_i32_0 : i32, i32
  }
  func.func @transform_3(%arg0: i32) -> (i32, i32) {
    %c0_i32 = arith.constant 0 : i32
    %c0_i32_0 = arith.constant 0 : i32
    %c0_i32_1 = arith.constant 0 : i32
    return %c0_i32, %c0_i32_0 : i32, i32
  }
  func.func @transform_4(%arg0: i32) -> (i32, i32) {
    %c0_i32 = arith.constant 0 : i32
    %c0_i32_0 = arith.constant 0 : i32
    %c0_i32_1 = arith.constant 0 : i32
    return %c0_i32, %c0_i32_0 : i32, i32
  }
  func.func @transform_5(%arg0: i32) -> (i32, i32) {
    %c0_i32 = arith.constant 0 : i32
    %c0_i32_0 = arith.constant 0 : i32
    %c0_i32_1 = arith.constant 0 : i32
    return %c0_i32, %c0_i32_0 : i32, i32
  }
  func.func @transform_6(%arg0: i32) -> (i32, i32) {
    %c0_i32 = arith.constant 0 : i32
    %c0_i32_0 = arith.constant 0 : i32
    %c0_i32_1 = arith.constant 0 : i32
    return %c0_i32, %c0_i32_0 : i32, i32
  }
  func.func @transform_7(%arg0: i32) -> (i32, i32) {
    %c0_i32 = arith.constant 0 : i32
    %c0_i32_0 = arith.constant 0 : i32
    return %arg0, %c0_i32 : i32, i32
  }
}

</mosaic_0001>

<bundles_post_ra>
// kernel: tpu_custom_call.1
= control target key start
LH: loop header
LB: loop body
LE: loop exit
PB: predicated region body
PF: predicated region fallthrough
CT: control target
= control target key end

     0   :  { %v395_v1 = vmov 0.0   ;;  %vm71_vm0 = vcmask 1046528   ;;  %vm72_vm1 = vcmask 1047552   ;;  %v396_v3 = vmov 65535   ;;  %s498_s0 = inlined_call_operand.vmem [shape: bf16[8,63], index: 0, kind: input, shape index: {}]   ;;  %s499_s1 = inlined_call_operand.vmem [shape: bf16[63,45], index: 1, kind: input, shape index: {}]   ;;  %s500_s2 = inlined_call_operand.vmem [shape: f32[1,45], index: 2, kind: input, shape index: {}]   ;;  %s501_s3 = inlined_call_operand.vmem [shape: bf16[45,35], index: 3, kind: input, shape index: {}]   ;;  %s502_s4 = inlined_call_operand.vmem [shape: f32[1,35], index: 4, kind: input, shape index: {}]   ;;  %s503_s5 = inlined_call_operand.vmem [shape: bf16[35,5], index: 5, kind: input, shape index: {}]   ;;  %s504_s6 = inlined_call_operand.vmem [shape: f32[1,5], index: 6, kind: input, shape index: {}]   ;;  %s505_s7 = inlined_call_operand.hbm [shape: f32[8,5], index: 7, kind: output, shape index: {}]  }
   0x1   :  { %v361_v0 = vld [vmem:[%s499_s1] sm:$0xff]   ;;  %325 = vmatprep.subr.bf16.mxu0 %v395_v1  ;;  %337 = vmatprep.subr.bf16.mxu1 %v395_v1  ;;  %v362_v2 = vld [vmem:[%s499_s1 + $0x8] sm:$0xff]   ;;  %v73_v4 = vsel %vm71_vm0, 4294967295, %v396_v3  ;;  %v363_v6 = vld [vmem:[%s499_s1 + $0x10] sm:$0xff]   ;;  %vm397_vm2 = vmmov 0  }
   0x2   :  { %326 = vmatpush3.bf16.msra.mxu0 %v361_v0  ;;  %v365_v5 = vld [vmem:[%s501_s3] sm:$0xff]   ;;  %333 = vmatprep.mubr.msk.bf16.mxu0 %vm397_vm2, %v395_v1  ;;  %v364_v7 = vld [vmem:[%s499_s1 + $0x18] sm:$0xff]   ;;  %v74_v8 = vsel %vm72_vm1, %v73_v4, 0 }
   0x3   :  { %327 = vmatprep.subr.bf16.mxu0 %v395_v1  ;;  %343 = vmatprep.mubr.msk.bf16.mxu1 %vm397_vm2, %v395_v1 }
   0x4   :  { %338 = vmatpush3.bf16.msra.mxu1 %v365_v5 }
   0x5   :  { %339 = vmatprep.subr.bf16.mxu1 %v395_v1 }
   0x6   :  { %328 = vmatpush3.bf16.msra.mxu0 %v362_v2 }
   0x7   :  { %329 = vmatprep.subr.bf16.mxu0 %v395_v1 }
   0x8   :  { %12 = vsyncpa [#allocation3], 0  ;;  %v76_v9 = vand.u32 %v364_v7, %v74_v8  ;;  %v28_v10 = vld [vmem:[%s498_s0] sm:$0xf]  ;;  %vm67_vm3 = vcmask 515072   ;;  %v366_v11 = vld [vmem:[%s501_s3 + $0x8] sm:$0xff]  }
   0x9   :  { %vm154_vm4 = vcmask 1045504   ;;  %340 = vmatpush3.bf16.msra.mxu1 %v366_v11  ;;  %v367_v12 = vld [vmem:[%s501_s3 + $0x10] sm:$0x7f]   ;;  %v296_v16 = vld [vmem:[%s500_s2] ss:$0 sm:$0xff]  ;;  %vm150_vm5 = vcmask 367616  }
   0xa   :  { %330 = vmatpush3.bf16.msra.mxu0 %v363_v6  ;;  %v155_v13 = vsel %vm154_vm4, 4294967295, %v396_v3  ;;  %341 = vmatprep.subr.bf16.mxu1 %v395_v1  ;;  %v368_v23 = vld [vmem:[%s503_s5] sm:$0xff]   ;;  %v369_v25 = vld [vmem:[%s503_s5 + $0x8] sm:$0xff]   ;;  %vm233_vm6 = vcmask 1040384   ;;  %vm234_vm7 = vcmask 1041408   ;;  %vm229_vm8 = vcmask 285696  }
   0xb   :  { %331 = vmatprep.subr.bf16.mxu0 %v395_v1  ;;  %v156_v14 = vsel %vm71_vm0, %v155_v13, 0  ;;  %v370_v26 = vld [vmem:[%s503_s5 + $0x10] ss:$0 sps:$4 sm:$0x33]   ;;  %v235_v27 = vsel %vm233_vm6, 4294967295, %v396_v3  ;;  %s398_s24 = smov [#allocation2]  }
   0xc   :  { %v158_v15 = vand.u32 %v367_v12, %v156_v14  ;;  %v236_v28 = vsel %vm234_vm7, %v235_v27, 0  ;;  %v302_v30 = vld [vmem:[%s502_s4] ss:$0 sm:$0xff]  ;;  %s288_s25 = sshll.u32 %s398_s24, 4  ;;  %vm280_vm9 = vcmask 39936   ;;  %s289_s25 = int_to_ptr.vmem [resolvable:$true] %s288_s25 }
   0xd   :  { %v238_v29 = vand.u32 %v370_v26, %v236_v28  ;;  %v307_v38 = vld [vmem:[%s504_s6] ss:$0 sm:$0xff]  ;;  %s371_s4 = scalar_lea.vmem %s289_s25, 128  ;;  %p376_p1 = scmp.lt.s32.totalorder %s289_s25, %s289_s25 }
   0xe   :  { %332 = vmatpush3.bf16.msra.mxu0 %v76_v9  ;;  %342 = vmatpush3.bf16.msra.mxu1 %v158_v15  ;;  %p372_p0 = scmp.ne.s32.totalorder %s289_s25, %s371_s4  ;;  %p377_p2 = scmp.lt.s32.totalorder %s371_s4, %s371_s4 }
   0xf   :  { %347 = vmatprep.subr.bf16.mxu1 %v395_v1 }
  0x10   :  { %p378_p3 = por %p377_p2, %p376_p1 }
  0x11   :  { %334 = vmatmul.mubr.msk.bf16.vlgmr.msra.gmra.mrb[0].mxu0 %vm67_vm3, %v28_v10 }
  0x12   :  { %p379_p4 = pnand %p378_p3, %p372_p0 }
  0xe4   :  { %v112_v17 = vpop.f32.mrb[0].mxu0 }
  0xe5   :  { %v113_v18 = vadd.f32 %v296_v16, %v112_v17  ;;  %v335_v19 = vpop.f32.mrb[1].mxu0 }
  0xe6   :  { %v115_v20 = vpop.f32.mrb[2].mxu0 }
  0xe7   :  { %v118_v21 = vmax.f32 %v113_v18, 0.0  ;;  %v336_v22 = vpop.f32.mrb[3].mxu0 }
  0xe9   :  { %v119_v24 = vpack.c.bf16 %v118_v21, %v118_v21 }
  0xeb   :  { %344 = vmatmul.mubr.msk.bf16.vlgmr.msra.gmra.mrb[0].mxu1 %vm150_vm5, %v119_v24 }
  0xec   :  { %348 = vmatpush3.bf16.msra.mxu1 %v368_v23  ;;  %353 = vmatprep.mubr.msk.bf16.mxu1 %vm397_vm2, %v395_v1 }
  0xed   :  { %349 = vmatprep.subr.bf16.mxu1 %v395_v1 }
  0xf0   :  { %350 = vmatpush3.bf16.msra.mxu1 %v369_v25 }
  0xf1   :  { %351 = vmatprep.subr.bf16.mxu1 %v395_v1 }
  0xf4   :  { %352 = vmatpush3.bf16.msra.mxu1 %v238_v29 }
 0x1be   :  { %v194_v31 = vpop.f32.mrb[0].mxu1 }
 0x1bf   :  { %v195_v32 = vadd.f32 %v302_v30, %v194_v31  ;;  %v345_v33 = vpop.f32.mrb[1].mxu1 }
 0x1c0   :  { %v197_v34 = vpop.f32.mrb[2].mxu1 }
 0x1c1   :  { %v200_v35 = vmax.f32 %v195_v32, 0.0  ;;  %v346_v36 = vpop.f32.mrb[3].mxu1 }
 0x1c3   :  { %v201_v37 = vpack.c.bf16 %v200_v35, %v200_v35 }
 0x1c5   :  { %354 = vmatmul.mubr.msk.bf16.vlgmr.msra.gmra.mrb[4].mxu1 %vm229_vm8, %v201_v37 }
 0x298   :  { %v274_v39 = vpop.f32.mrb[4].mxu1 }
 0x299   :  { %v275_v40 = vadd.f32 %v307_v38, %v274_v39  ;;  %v355_v41 = vpop.f32.mrb[5].mxu1 }
 0x29a   :  { %v277_v42 = vpop.f32.mrb[6].mxu1 }
 0x29b   :  { %v356_v43 = vpop.f32.mrb[7].mxu1  ;;  %281 = vst.msk [vmem:[#allocation2] sm:$0xff] %vm280_vm9, %v275_v40 }
 0x29c   :  { %382 = shalt.err (!%p379_p4)
}
 0x29d   :  { %s383_s6 = scalar_lea.hbm %s505_s7, 128 }
 0x29e   :  { %p384_p5 = scmp.ne.s32.totalorder %s505_s7, %s383_s6  ;;  %p387_p6 = scmp.lt.u32.totalorder %s383_s6, %s505_s7 }
 0x2a0   :  { %p389_p7 = pnand %p387_p6, %p384_p5 }
 0x2a2   :  { %392 = shalt.err (!%p389_p7)
}
 0x2a3   :  { %291 = dma.vmem_to_hbm [thread:$0]  %s289_s25, 128, %s505_s7, [#allocation3]  }
 0x2a4   :  { %393 = dma.done.wait [#allocation3], 128  }
 0x2a5   :  { %394 = vsyncadd [#allocation3], 4294967168 }
 0x2a6   :  { %295 = vsyncpa [#allocation3], 1 }

</bundles_post_ra>
